<compile_context>
chip_gen: v6e
topology: v6e:2x2x1
jax: 0.10.0
libtpu: 0.0.40
codegen_flags: <defaults>
</compile_context>

<pallas_src>
import functools

import jax
import jax.numpy as jnp
from jax import lax
from jax.experimental import pallas as pl
from jax.experimental.pallas import tpu as pltpu


def _sigmoid(x):
    # sigmoid(x) == 0.5 * tanh(0.5 * x) + 0.5 : one EUP op instead of exp+recip.
    return 0.5 * jnp.tanh(0.5 * x) + 0.5


def _yolo_kernel(pred_ref, out_ref, *, stride, grid_g, n_anchors,
                 block_anchors, anchors_wh, transpose_out):
    """Decode one (b_a, c5, S) block of raw YOLO conv outputs.

    Sublanes = the 5+nC channels, lanes = flattened spatial index gy*G + gx
    (full extent, lane-dense).  Grid = (N, nA // b_a); the anchors covered by
    this block are derived from program_id(1) + static constants.
    """
    b_a, c5, s = pred_ref.shape

    # --- per-lane grid-cell offsets, computed in-kernel (cheap VPU/EUP filler).
    # gy = floor((s + 0.5) / G) is exact: s and s+0.5 are exact in f32, the true
    # quotient is >= 0.5/G away from every integer, and the f32 divide error is
    # < G * 2^-22 < 0.5/G for every G < 1448 (YOLO grids are <= a few hundred).
    # No reciprocal-rounding risk, no vector integer division needed.
    s_f = lax.broadcasted_iota(jnp.int32, (1, 1, s), 2).astype(jnp.float32)
    gy = jnp.floor((s_f + 0.5) / jnp.float32(grid_g))
    gx = s_f - gy * jnp.float32(grid_g)
    row = lax.broadcasted_iota(jnp.int32, (1, 2, 1), 1)
    gxy = jnp.where(row == 0, gx, gy)                       # (1, 2, S)

    # --- anchor (w, h) for every anchor row of this block: tiny where-chain
    # over splat constants, broadcast over lanes.  Raw anchors are used
    # directly because scaled_anchor * stride == anchor.
    a_row = (pl.program_id(1) * block_anchors
             + lax.broadcasted_iota(jnp.int32, (b_a, 2, 1), 0))
    ch = lax.broadcasted_iota(jnp.int32, (b_a, 2, 1), 1)
    awh = jnp.where(ch == 0, jnp.float32(anchors_wh[0][0]),
                    jnp.float32(anchors_wh[0][1]))
    for i in range(1, n_anchors):
        hit = a_row == i
        awh = jnp.where(hit & (ch == 0), jnp.float32(anchors_wh[i][0]), awh)
        awh = jnp.where(hit & (ch == 1), jnp.float32(anchors_wh[i][1]), awh)

    # --- decode (f32 math regardless of the streamed dtype).
    pred = pred_ref[...].astype(jnp.float32)                # (b_a, c5, S)
    bxy = (_sigmoid(pred[:, 0:2, :]) + gxy) * jnp.float32(stride)
    bwh = jnp.exp(pred[:, 2:4, :]) * awh                     # no sigmoid on w/h
    rest = _sigmoid(pred[:, 4:, :])                          # conf + classes

    # --- stores via static sub-slices (no concatenate pass before the store).
    if transpose_out:
        # Emit (b_a, S, c5) so the wrapper reshape is a pure view; only used
        # when c5 >= 32 so stores stay reasonably lane-dense.  XLU is idle.
        out_ref[:, :, 0:2] = jnp.transpose(bxy, (0, 2, 1)).astype(out_ref.dtype)
        out_ref[:, :, 2:4] = jnp.transpose(bwh, (0, 2, 1)).astype(out_ref.dtype)
        out_ref[:, :, 4:] = jnp.transpose(rest, (0, 2, 1)).astype(out_ref.dtype)
    else:
        out_ref[:, 0:2, :] = bxy.astype(out_ref.dtype)
        out_ref[:, 2:4, :] = bwh.astype(out_ref.dtype)
        out_ref[:, 4:, :] = rest.astype(out_ref.dtype)


def yolo_layer_forward(x, anchors, num_classes, img_dim=416):
    """JAX/Pallas equivalent of YOLOLayer.forward(x, targets=None).

    x: (N, nA*(5+nC), G, G) float32 / bf16 (NCHW conv output).
    Returns (output, 0) where output has shape (N, nA*G*G, 5+nC), float32.
    """
    # TODO(synk): targets != None branch (build_targets + losses) not implemented.
    anchors = tuple((float(w), float(h)) for (w, h) in anchors)
    n_a = len(anchors)
    c5 = num_classes + 5
    n, ch, g, g2 = x.shape
    assert ch == n_a * c5 and g == g2, (x.shape, n_a, c5)
    stride = float(img_dim) / float(g)
    s_total = g * g

    # Stream the conv output in its own dtype (bf16 halves HBM read traffic);
    # math is f32 inside the kernel, output is f32 like the PyTorch module.
    if x.dtype not in (jnp.float32, jnp.bfloat16, jnp.float16):
        x = x.astype(jnp.float32)
    # Native NCHW layout -> (N, nA, c5, G*G): pure reshape, no transpose / pad.
    pred4d = x.reshape(n, n_a, c5, s_total)

    # Block = (1 image, b_a anchors, all channels, all spatial).  Pick the
    # biggest b_a whose double-buffered in+out footprint fits a v7x-safe budget.
    in_item = x.dtype.itemsize
    budget = 12 * 1024 * 1024

    def footprint(b):        # double-buffered input + f32 output, bytes
        return 2 * b * c5 * s_total * (in_item + 4)

    b_a = 1
    for d in range(n_a, 0, -1):
        if n_a % d == 0 and footprint(d) <= budget:
            b_a = d
            break
    # Keep >= 2 grid steps when possible so v7x's two TensorCores both get work.
    if n * (n_a // b_a) < 2 and b_a > 1:
        for d in range(b_a - 1, 0, -1):
            if n_a % d == 0:
                b_a = d
                break

    # Transposed in-kernel output only when c5 is large enough for lane-dense
    # stores; otherwise keep channel-major and transpose once in the wrapper.
    transpose_out = c5 >= 32

    kernel = functools.partial(
        _yolo_kernel, stride=stride, grid_g=g, n_anchors=n_a,
        block_anchors=b_a, anchors_wh=anchors, transpose_out=transpose_out)

    grid = (n, n_a // b_a)
    in_spec = pl.BlockSpec((None, b_a, c5, s_total), lambda i, j: (i, j, 0, 0))
    if transpose_out:
        out_shape = jax.ShapeDtypeStruct((n, n_a, s_total, c5), jnp.float32)
        out_spec = pl.BlockSpec((None, b_a, s_total, c5),
                                lambda i, j: (i, j, 0, 0))
    else:
        out_shape = jax.ShapeDtypeStruct((n, n_a, c5, s_total), jnp.float32)
        out_spec = pl.BlockSpec((None, b_a, c5, s_total),
                                lambda i, j: (i, j, 0, 0))

    vmem_limit = int(min(max(footprint(b_a) + (2 << 20), 16 << 20), 48 << 20))

    out = pl.pallas_call(
        kernel,
        out_shape=out_shape,
        grid=grid,
        in_specs=[in_spec],
        out_specs=out_spec,
        compiler_params=pltpu.CompilerParams(
            dimension_semantics=("parallel", "parallel"),
            vmem_limit_bytes=vmem_limit),
    )(pred4d)

    if transpose_out:
        out = out.reshape(n, n_a * s_total, c5)              # pure view
    else:
        out = out.transpose(0, 1, 3, 2).reshape(n, n_a * s_total, c5)
    return out, 0


def _yolo_reference(x, anchors, num_classes, img_dim=416):
    """Pure-JAX reference reproducing the PyTorch forward (targets=None)."""
    anchors = jnp.asarray(anchors, dtype=jnp.float32)
    n_a = anchors.shape[0]
    c5 = num_classes + 5
    n, _, g, _ = x.shape
    stride = float(img_dim) / float(g)
    pred = x.astype(jnp.float32).reshape(n, n_a, c5, g, g).transpose(0, 1, 3, 4, 2)
    sx = jax.nn.sigmoid(pred[..., 0])
    sy = jax.nn.sigmoid(pred[..., 1])
    w = pred[..., 2]
    h = pred[..., 3]
    conf = jax.nn.sigmoid(pred[..., 4])
    cls = jax.nn.sigmoid(pred[..., 5:])
    grid_x = jnp.arange(g, dtype=jnp.float32)[None, None, None, :]
    grid_y = jnp.arange(g, dtype=jnp.float32)[None, None, :, None]
    scaled = anchors / stride
    aw = scaled[:, 0][None, :, None, None]
    ah = scaled[:, 1][None, :, None, None]
    bx = sx + grid_x
    by = sy + grid_y
    bw = jnp.exp(w) * aw
    bh = jnp.exp(h) * ah
    boxes = jnp.stack([bx, by, bw, bh], axis=-1)
    out = jnp.concatenate(
        [boxes.reshape(n, -1, 4) * stride,
         conf.reshape(n, -1, 1),
         cls.reshape(n, -1, num_classes)], axis=-1)
    return out


if __name__ == "__main__":
    # Small deterministic setup consistent with the module's forward:
    #   num_anchors = 3, num_classes = 3 -> C = 3*(5+3) = 24 channels
    #   batch = 2, grid_size = 8, img_dim = 416
    anchors = [(10.0, 13.0), (16.0, 30.0), (33.0, 23.0)]
    num_classes = 3
    n, g = 2, 8
    n_a, c5 = len(anchors), num_classes + 5

    key = jax.random.PRNGKey(0)
    x = jax.random.normal(key, (n, n_a * c5, g, g), dtype=jnp.float32)

    out, loss = yolo_layer_forward(x, anchors, num_classes, img_dim=416)
    out = jax.block_until_ready(out)

    ref = _yolo_reference(x, anchors, num_classes, img_dim=416)
    assert out.shape == (n, n_a * g * g, c5), out.shape
    assert jnp.allclose(out, ref, rtol=1e-5, atol=1e-4), "mismatch vs reference"
    assert loss == 0

    print("KERNEL_OK")
</pallas_src>

<mosaic_0001>
module attributes {stable_mosaic.version = 11 : i64} {
  func.func @_yolo_kernel(%arg0: i32, %arg1: i32, %arg2: memref<1x3x8x64xf32, #tpu.memory_space<vmem>>, %arg3: memref<1x3x8x64xf32, #tpu.memory_space<vmem>>) attributes {dimension_semantics = [#tpu.dimension_semantics<parallel>, #tpu.dimension_semantics<parallel>], iteration_bounds = array<i64: 2, 1>, scalar_prefetch = 0 : i64, scratch_operands = 0 : i64, tpu.core_type = #tpu.core_type<tc>, window_params = [{transform_indices = @transform_0, window_bounds = array<i64: 1, 3, 8, 64>}, {transform_indices = @transform_1, window_bounds = array<i64: 1, 3, 8, 64>}]} {
    %0 = tpu.iota {dimensions = array<i32: 2>} : vector<1x1x64xi32>
    %1 = arith.sitofp %0 : vector<1x1x64xi32> to vector<1x1x64xf32>
    %cst = arith.constant 5.000000e-01 : f32
    %2 = vector.broadcast %cst : f32 to vector<1x1x64xf32>
    %3 = arith.addf %1, %2 : vector<1x1x64xf32>
    %cst_0 = arith.constant 8.000000e+00 : f32
    %4 = vector.broadcast %cst_0 : f32 to vector<1x1x64xf32>
    %5 = arith.divf %3, %4 : vector<1x1x64xf32>
    %6 = math.floor %5 : vector<1x1x64xf32>
    %cst_1 = arith.constant 8.000000e+00 : f32
    %7 = vector.broadcast %cst_1 : f32 to vector<1x1x64xf32>
    %8 = arith.mulf %6, %7 : vector<1x1x64xf32>
    %9 = arith.subf %1, %8 : vector<1x1x64xf32>
    %10 = tpu.iota {dimensions = array<i32: 1>} : vector<1x2x1xi32>
    %c0_i32 = arith.constant 0 : i32
    %11 = vector.broadcast %c0_i32 : i32 to vector<1x2x1xi32>
    %12 = arith.cmpi eq, %10, %11 : vector<1x2x1xi32>
    %13 = vector.shape_cast %12 : vector<1x2x1xi1> to vector<1x2x1xi1>
    %14 = vector.broadcast %13 : vector<1x2x1xi1> to vector<1x2x64xi1>
    %15 = vector.shape_cast %9 : vector<1x1x64xf32> to vector<1x1x64xf32>
    %16 = vector.broadcast %15 : vector<1x1x64xf32> to vector<1x2x64xf32>
    %17 = vector.shape_cast %6 : vector<1x1x64xf32> to vector<1x1x64xf32>
    %18 = vector.broadcast %17 : vector<1x1x64xf32> to vector<1x2x64xf32>
    %19 = arith.select %14, %16, %18 : vector<1x2x64xi1>, vector<1x2x64xf32>
    %c3_i32 = arith.constant 3 : i32
    %20 = arith.muli %arg1, %c3_i32 : i32
    %21 = tpu.iota {dimensions = array<i32: 0>} : vector<3x2x1xi32>
    %22 = vector.broadcast %20 : i32 to vector<3x2x1xi32>
    %23 = arith.addi %22, %21 : vector<3x2x1xi32>
    %24 = tpu.iota {dimensions = array<i32: 1>} : vector<3x2x1xi32>
    %c0_i32_2 = arith.constant 0 : i32
    %25 = vector.broadcast %c0_i32_2 : i32 to vector<3x2x1xi32>
    %26 = arith.cmpi eq, %24, %25 : vector<3x2x1xi32>
    %cst_3 = arith.constant 1.000000e+01 : f32
    %cst_4 = arith.constant 1.300000e+01 : f32
    %27 = vector.broadcast %cst_3 : f32 to vector<3x2x1xf32>
    %28 = vector.broadcast %cst_4 : f32 to vector<3x2x1xf32>
    %29 = arith.select %26, %27, %28 : vector<3x2x1xi1>, vector<3x2x1xf32>
    %c1_i32 = arith.constant 1 : i32
    %30 = vector.broadcast %c1_i32 : i32 to vector<3x2x1xi32>
    %31 = arith.cmpi eq, %23, %30 : vector<3x2x1xi32>
    %c0_i32_5 = arith.constant 0 : i32
    %32 = vector.broadcast %c0_i32_5 : i32 to vector<3x2x1xi32>
    %33 = arith.cmpi eq, %24, %32 : vector<3x2x1xi32>
    %34 = arith.andi %31, %33 : vector<3x2x1xi1>
    %cst_6 = arith.constant 1.600000e+01 : f32
    %35 = vector.broadcast %cst_6 : f32 to vector<3x2x1xf32>
    %36 = arith.select %34, %35, %29 : vector<3x2x1xi1>, vector<3x2x1xf32>
    %c1_i32_7 = arith.constant 1 : i32
    %37 = vector.broadcast %c1_i32_7 : i32 to vector<3x2x1xi32>
    %38 = arith.cmpi eq, %24, %37 : vector<3x2x1xi32>
    %39 = arith.andi %31, %38 : vector<3x2x1xi1>
    %cst_8 = arith.constant 3.000000e+01 : f32
    %40 = vector.broadcast %cst_8 : f32 to vector<3x2x1xf32>
    %41 = arith.select %39, %40, %36 : vector<3x2x1xi1>, vector<3x2x1xf32>
    %c2_i32 = arith.constant 2 : i32
    %42 = vector.broadcast %c2_i32 : i32 to vector<3x2x1xi32>
    %43 = arith.cmpi eq, %23, %42 : vector<3x2x1xi32>
    %c0_i32_9 = arith.constant 0 : i32
    %44 = vector.broadcast %c0_i32_9 : i32 to vector<3x2x1xi32>
    %45 = arith.cmpi eq, %24, %44 : vector<3x2x1xi32>
    %46 = arith.andi %43, %45 : vector<3x2x1xi1>
    %cst_10 = arith.constant 3.300000e+01 : f32
    %47 = vector.broadcast %cst_10 : f32 to vector<3x2x1xf32>
    %48 = arith.select %46, %47, %41 : vector<3x2x1xi1>, vector<3x2x1xf32>
    %c1_i32_11 = arith.constant 1 : i32
    %49 = vector.broadcast %c1_i32_11 : i32 to vector<3x2x1xi32>
    %50 = arith.cmpi eq, %24, %49 : vector<3x2x1xi32>
    %51 = arith.andi %43, %50 : vector<3x2x1xi1>
    %cst_12 = arith.constant 2.300000e+01 : f32
    %52 = vector.broadcast %cst_12 : f32 to vector<3x2x1xf32>
    %53 = arith.select %51, %52, %48 : vector<3x2x1xi1>, vector<3x2x1xf32>
    %c0 = arith.constant 0 : index
    %c0_13 = arith.constant 0 : index
    %c0_14 = arith.constant 0 : index
    %c0_15 = arith.constant 0 : index
    %54 = vector.load %arg2[%c0, %c0_13, %c0_14, %c0_15] : memref<1x3x8x64xf32, #tpu.memory_space<vmem>>, vector<1x3x8x64xf32>
    %55 = vector.shape_cast %54 : vector<1x3x8x64xf32> to vector<3x8x64xf32>
    %56 = vector.extract_strided_slice %55 {offsets = [0, 0, 0], sizes = [3, 2, 64], strides = [1, 1, 1]} : vector<3x8x64xf32> to vector<3x2x64xf32>
    %cst_16 = arith.constant 5.000000e-01 : f32
    %57 = vector.broadcast %cst_16 : f32 to vector<3x2x64xf32>
    %58 = arith.mulf %57, %56 : vector<3x2x64xf32>
    %59 = math.tanh %58 : vector<3x2x64xf32>
    %cst_17 = arith.constant 5.000000e-01 : f32
    %60 = vector.broadcast %cst_17 : f32 to vector<3x2x64xf32>
    %61 = arith.mulf %60, %59 : vector<3x2x64xf32>
    %cst_18 = arith.constant 5.000000e-01 : f32
    %62 = vector.broadcast %cst_18 : f32 to vector<3x2x64xf32>
    %63 = arith.addf %61, %62 : vector<3x2x64xf32>
    %64 = vector.broadcast %19 : vector<1x2x64xf32> to vector<3x2x64xf32>
    %65 = arith.addf %63, %64 : vector<3x2x64xf32>
    %cst_19 = arith.constant 5.200000e+01 : f32
    %66 = vector.broadcast %cst_19 : f32 to vector<3x2x64xf32>
    %67 = arith.mulf %65, %66 : vector<3x2x64xf32>
    %68 = vector.extract_strided_slice %55 {offsets = [0, 2, 0], sizes = [3, 2, 64], strides = [1, 1, 1]} : vector<3x8x64xf32> to vector<3x2x64xf32>
    %69 = math.exp %68 : vector<3x2x64xf32>
    %70 = vector.broadcast %53 : vector<3x2x1xf32> to vector<3x2x64xf32>
    %71 = arith.mulf %69, %70 : vector<3x2x64xf32>
    %72 = vector.extract_strided_slice %55 {offsets = [0, 4, 0], sizes = [3, 4, 64], strides = [1, 1, 1]} : vector<3x8x64xf32> to vector<3x4x64xf32>
    %cst_20 = arith.constant 5.000000e-01 : f32
    %73 = vector.broadcast %cst_20 : f32 to vector<3x4x64xf32>
    %74 = arith.mulf %73, %72 : vector<3x4x64xf32>
    %75 = math.tanh %74 : vector<3x4x64xf32>
    %cst_21 = arith.constant 5.000000e-01 : f32
    %76 = vector.broadcast %cst_21 : f32 to vector<3x4x64xf32>
    %77 = arith.mulf %76, %75 : vector<3x4x64xf32>
    %cst_22 = arith.constant 5.000000e-01 : f32
    %78 = vector.broadcast %cst_22 : f32 to vector<3x4x64xf32>
    %79 = arith.addf %77, %78 : vector<3x4x64xf32>
    %c0_23 = arith.constant 0 : index
    %c0_24 = arith.constant 0 : index
    %c0_25 = arith.constant 0 : index
    %c0_26 = arith.constant 0 : index
    %80 = vector.load %arg3[%c0_23, %c0_24, %c0_25, %c0_26] : memref<1x3x8x64xf32, #tpu.memory_space<vmem>>, vector<1x3x2x64xf32>
    %81 = vector.shape_cast %80 : vector<1x3x2x64xf32> to vector<3x2x64xf32>
    %82 = vector.shape_cast %67 : vector<3x2x64xf32> to vector<1x3x2x64xf32>
    tpu.vector_store %arg3[%c0_23, %c0_24, %c0_25, %c0_26], %82 {strides = array<i32>} : memref<1x3x8x64xf32, #tpu.memory_space<vmem>>, vector<1x3x2x64xf32>,
    %c0_27 = arith.constant 0 : index
    %c0_28 = arith.constant 0 : index
    %c2 = arith.constant 2 : index
    %c0_29 = arith.constant 0 : index
    %83 = vector.load %arg3[%c0_27, %c0_28, %c2, %c0_29] : memref<1x3x8x64xf32, #tpu.memory_space<vmem>>, vector<1x3x2x64xf32>
    %84 = vector.shape_cast %83 : vector<1x3x2x64xf32> to vector<3x2x64xf32>
    %85 = vector.shape_cast %71 : vector<3x2x64xf32> to vector<1x3x2x64xf32>
    tpu.vector_store %arg3[%c0_27, %c0_28, %c2, %c0_29], %85 {strides = array<i32>} : memref<1x3x8x64xf32, #tpu.memory_space<vmem>>, vector<1x3x2x64xf32>,
    %c0_30 = arith.constant 0 : index
    %c0_31 = arith.constant 0 : index
    %c4 = arith.constant 4 : index
    %c0_32 = arith.constant 0 : index
    %86 = vector.load %arg3[%c0_30, %c0_31, %c4, %c0_32] : memref<1x3x8x64xf32, #tpu.memory_space<vmem>>, vector<1x3x4x64xf32>
    %87 = vector.shape_cast %86 : vector<1x3x4x64xf32> to vector<3x4x64xf32>
    %88 = vector.shape_cast %79 : vector<3x4x64xf32> to vector<1x3x4x64xf32>
    tpu.vector_store %arg3[%c0_30, %c0_31, %c4, %c0_32], %88 {strides = array<i32>} : memref<1x3x8x64xf32, #tpu.memory_space<vmem>>, vector<1x3x4x64xf32>,
    return
  }
  func.func @transform_0(%arg0: i32, %arg1: i32) -> (i32, i32, i32, i32) {
    %c0_i32 = arith.constant 0 : i32
    %c0_i32_0 = arith.constant 0 : i32
    %c0_i32_1 = arith.constant 0 : i32
    return %arg0, %arg1, %c0_i32, %c0_i32_0 : i32, i32, i32, i32
  }
  func.func @transform_1(%arg0: i32, %arg1: i32) -> (i32, i32, i32, i32) {
    %c0_i32 = arith.constant 0 : i32
    %c0_i32_0 = arith.constant 0 : i32
    %c0_i32_1 = arith.constant 0 : i32
    return %arg0, %arg1, %c0_i32, %c0_i32_0 : i32, i32, i32, i32
  }
}

</mosaic_0001>

<bundles_post_ra>
// kernel: tpu_custom_call.1
= control target key start
LH: loop header
LB: loop body
LE: loop exit
PB: predicated region body
PF: predicated region fallthrough
CT: control target
= control target key end

     0   :  { %6 = vsyncpa [#allocation3], 0  ;;  %s742_s0 = inlined_call_operand.hbm [shape: f32[2,3,8,64], index: 0, kind: input, shape index: {}]   ;;  %s743_s1 = inlined_call_operand.hbm [shape: f32[2,3,8,64], index: 1, kind: output, shape index: {}]  }
   0x1   :  { %8 = vsyncpa [#allocation3 + $0x1], 0 }
   0x2   :  { %9 = vsyncpa [#allocation4], 0 }
   0x3   :  { %11 = vsyncpa [#allocation4 + $0x1], 0  ;;  %s579_s6 = smov 0   ;;  %s581_s7 = smov 0  }
   0x4   :  { %s583_s8 = smov 0   ;;  %s585_s9 = smov 0  }
   0x5   :  { %s587_s10 = smov 0   ;;  %s589_s11 = smov 0  }
   0x6 LB: > { %s360_s12 = sadd.s32 4294967295, %s560_s11   ;;  %s361_s13 = sadd.s32 4294967294, %s560_s11   ;;  %s560_s11 = sphi %s589_s11, %s17_s11   ;;  %s556_s10 = sphi %s587_s10, %s754_s10   ;;  %s552_s9 = sphi %s585_s9, %s753_s9   ;;  %s548_s8 = sphi %s583_s8, %s752_s8   ;;  %s544_s7 = sphi %s581_s7, %s751_s7   ;;  %s540_s6 = sphi %s579_s6, %s750_s6  }
   0x7   : > { %s29_s14 = sadd.s32 1, %s556_s10  ;;  %s38_s15 = sadd.s32 1, %s548_s8 }
   0x8   : > { %p31_p0 = scmp.ge.s32.totalorder %s29_s14, 2  ;;  %p45_p1 = scmp.ne.s32.totalorder %s548_s8, %s544_s7 }
   0x9   : > { %p46_p2 = scmp.eq.s32.totalorder %s560_s11, 0  ;;  %p51_p3 = scmp.ne.s32.totalorder %s544_s7, %s540_s6 }
   0xa   : > { %s756_s14 = smov (%p31_p0, %s29_s14), 0  ;;  %p52_p5 = scmp.eq.s32.totalorder %s360_s12, 0 }
   0xb   : > { %p620_p4 = por %p46_p2, %p45_p1  ;;  %s33_s17 = ssub.s32 %s556_s10, %s756_s14 }
   0xc   : > { %p77_p6 = scmp.eq.s32.totalorder %s360_s12, 1  ;;  %p36_p7 = scmp.eq.s32.totalorder %s33_s17, 0 }
   0xd   : > { %p626_p8 = por %p52_p5, %p51_p3  ;;  %p83_p10 = scmp.eq.s32.totalorder %s361_s13, 1 }
   0xe   : > { %p630_p9 = por %p77_p6, %p45_p1  ;;  %p385_p13 = scmp.lt.s32.totalorder %s560_s11, 2 }
   0xf   : > { %s635_s20 = scalar_select %p36_p7, %s548_s8, %s38_s15  }
  0x10   : > { %p637_p11 = por %p83_p10, %p51_p3  ;;  %s103_s22 = sand.u32 1, %s548_s8  }
  0x11   : > { %s369_s23 = smul.u32 24, %s103_s22  ;;  %p647_p0 = pnand %p385_p13, %p620_p4 }
  0x12   : > { %s370_s24 = smul.u32 384, %s556_s10  ;;  %p365_p1 = scmp.ge.s32.totalorder %s560_s11, 1 }
  0x13   : > { %s107_s29 = scalar_lea.vmem [#allocation2], %s369_s23  ;;  %s104_s2 = scalar_lea.sflag [#allocation3], %s103_s22 }
  0x14   : > { %s115_s28 = scalar_lea.hbm %s742_s0, %s370_s24  ;;  %s116_s30 = sshll.u32 %s107_s29, 4  ;;  %s117_s30 = int_to_ptr.vmem [resolvable:$true] %s116_s30 }
  0x15   : > { %p454_p2 = pneg %p647_p0  ;;  %s465_s3 = scalar_lea.vmem %s117_s30, 384 }
  0x16   : > { %p466_p3 = scmp.ne.s32.totalorder %s117_s30, %s465_s3  ;;  %s562_s4 = smov [#allocation2]  }
  0x17   : > { %s470_s5 = sshll.u32 %s562_s4, 4  ;;  %s471_s5 = int_to_ptr.vmem [resolvable:$false] %s470_s5 }
  0x18   : > { %p468_p5 = pnand %p466_p3, %p454_p2  ;;  %s472_s12 = scalar_lea.vmem %s471_s5, 768 }
  0x19   : > { %p473_p4 = scmp.lt.s32.totalorder %s117_s30, %s471_s5  ;;  %p474_p7 = scmp.lt.s32.totalorder %s472_s12, %s465_s3 }
  0x1a   : > { %p469_p6 = pneg %p468_p5 }
  0x1b   : > { %p475_p10 = por %p474_p7, %p473_p4 }
  0x1d   : > { %p476_p13 = pnand %p475_p10, %p469_p6 }
  0x1f   : > { %479 = shalt.err (!%p476_p13)
}
  0x20   : > { %s563_s13 = smov 128   ;;  %s564_s15 = smov 8  }
  0x21   : > { %380 = dma.hbm_to_vmem [thread:$0]  (!%p647_p0), %s115_s28, 384, %s117_s30, %s104_s2, %s563_s13, %s563_s13, %s564_s15  }
  0x22   : > { %p124_p12 = scmp.lt.s32.totalorder %s560_s11, 3 }
  0x24   : > { %p125_p2 = pnand %p365_p1, %p124_p12 }
  0x25   : > { %s663_s16 = sand.u32 (!%p125_p2), 1, %s544_s7  }
  0x26   : > { %128 = sbr.rel (%p125_p2) target bundleno = 87 (0x57), region = 24  ;;  %s131_s22 = scalar_lea.sflag (!%p125_p2), [#allocation3], %s663_s16 }
  0x27   : > { %s371_s17 = smul.u32 (!%p125_p2), 24, %s663_s16 }
  0x29   : > { %s134_s23 = scalar_lea.vmem (!%p125_p2), [#allocation2], %s371_s17 }
  0x2b   : > { %531 = dma.done.wait (%p626_p8), %s131_s22, 384  }
  0x2c   : > { %533 = vsyncadd (%p626_p8), %s131_s22, 4294966912  ;;  %v155_v0 = vlaneseq  ;;  %v206_v5 = vld [vmem:[%s134_s23] sm:$0xff]  ;;  %v207_v6 = vld [vmem:[%s134_s23 + $0x8] sm:$0xff]  ;;  %v565_v16 = vmov 13.0   ;;  %vm249_vm2 = vcmask 519170   ;;  %vm253_vm3 = vcmask 523268  }
  0x2d   : > { %v208_v7 = vld [vmem:[%s134_s23 + $0x10] sm:$0xff]  ;;  %v209_v8 = vmul.f32 0.5, %v206_v5  ;;  %v227_v9 = vmul.f32 1.442695, %v206_v5  ;;  %v210_v10 = vmul.f32 0.5, %v207_v6  ;;  %s152_s18 = scalar_lea.vmem [#allocation5], %s371_s17 }
  0x2e   : > { %v156_v1 = vand.u32 127, %v155_v0  ;;  %v165_v4 = vshrl.u32 %v155_v0, 7  ;;  %v229_v12 = vmul.f32 1.442695, %v207_v6  ;;  %v211_v13 = vmul.f32 0.5, %v208_v7  ;;  %s273_s24 = sshll.u32 %s152_s18, 4  ;;  %s687_s24 = int_to_ptr.vmem [resolvable:$true] %s273_s24 }
  0x2f   : > { %440 = vtanh.f32 %v209_v8  ;;  %v231_v14 = vmul.f32 1.442695, %v208_v7  ;;  %vm245_vm4 = vcmask 517120   ;;  %s372_s25 = smul.u32 384, %s552_s9  ;;  %s258_s28 = scalar_lea.sflag [#allocation4], %s663_s16 }
  0x30   : > { %v157_v2 = vcvt.s32.f32 %v156_v1  ;;  %vm166_vm0 = vcmp.eq.s32.totalorder %v165_v4, 0  ;;  %442 = vpow2.f32 %v227_v9  ;;  %vm184_vm1 = vcmp.eq.s32.totalorder %v165_v4, 1  ;;  %s480_s29 = scalar_lea.vmem %s687_s24, 384  ;;  %s566_s30 = smov [#allocation5]  }
  0x31   : > { %444 = vtanh.f32 %v210_v10  ;;  %v174_v17 = vsel %vm166_vm0, 10.0, %v565_v16  ;;  %s693_s9 = scalar_lea.hbm %s743_s1, %s372_s25  ;;  %p481_p8 = scmp.ne.s32.totalorder %s687_s24, %s480_s29 }
  0x32   : > { %v158_v3 = vadd.f32 0.5, %v157_v2  ;;  %446 = vpow2.f32 %v229_v12  ;;  %v182_v19 = vsel %vm166_vm0, 16.0, %v174_v17  ;;  %v199_v20 = vsel %vm166_vm0, 33.0, %v174_v17  ;;  %s484_s2 = sshll.u32 %s566_s30, 4  ;;  %s485_s2 = int_to_ptr.vmem [resolvable:$false] %s484_s2 }
  0x33   : > { %448 = vtanh.f32 %v211_v13  ;;  %v189_v21 = vsel %vm184_vm1, 30.0, %v182_v19  ;;  %v236_v23 = vrot.slane %v174_v17, 6  ;;  %v205_v24 = vsel %vm184_vm1, 23.0, %v199_v20  ;;  %p482_p12 = pnand %p481_p8, %p630_p9  ;;  %s486_s3 = scalar_lea.vmem %s485_s2, 768 }
  0x34   : > { %v160_v11 = vmul.f32 0.125, %v158_v3  ;;  %450 = vpow2.f32 %v231_v14  ;;  %v237_v26 = vrot.slane %v189_v21, 6  ;;  %v238_v32 = vrot.slane %v205_v24, 6  ;;  %p487_p1 = scmp.lt.s32.totalorder %s687_s24, %s485_s2  ;;  %p488_p3 = scmp.lt.s32.totalorder %s486_s3, %s480_s29 }
  0x35   : > { %p483_p0 = pneg %p482_p12 }
  0x36   : > { %v161_v15 = vfloor.f32 %v160_v11  ;;  %p489_p5 = por %p488_p3, %p487_p1 }
  0x38   : > { %v162_v18 = vmul.f32 8.0, %v161_v15  ;;  %p490_p6 = pnand %p489_p5, %p483_p0 }
  0x3a   : > { %v163_v22 = vsub.f32 %v157_v2, %v162_v18 }
  0x3c   : > { %v441_v25 = vpop.eup %440  ;;  %v169_v30 = vsel %vm166_vm0, %v163_v22, %v161_v15 }
  0x3d   : > { %v443_v27 = vpop.eup %442  ;;  %v215_v28 = vmul.f32 0.5, %v441_v25 }
  0x3e   : > { %v445_v29 = vpop.eup %444  ;;  %v242_v31 = vmul.f32 %v443_v27, %v236_v23 }
  0x3f   : > { %v447_v33 = vpop.eup %446  ;;  %v218_v34 = vadd.f32 0.5, %v215_v28  ;;  %v216_v35 = vmul.f32 0.5, %v445_v29 }
  0x40   : > { %v449_v36 = vpop.eup %448  ;;  %250 = vst.msk [vmem:[%s152_s18] sm:$0xc] %vm249_vm2, %v242_v31  ;;  %v243_v37 = vmul.f32 %v447_v33, %v237_v26 }
  0x41   : > { %v451_v38 = vpop.eup %450  ;;  %v221_v39 = vadd.f32 %v218_v34, %v169_v30  ;;  %v219_v40 = vadd.f32 0.5, %v216_v35  ;;  %v217_v41 = vmul.f32 0.5, %v449_v36  ;;  %254 = vst.msk [vmem:[%s152_s18] sm:$0xf0] %vm253_vm3, %v218_v34 }
  0x42   : > { %251 = vst.msk [vmem:[%s152_s18 + $0x8] sm:$0xc] %vm249_vm2, %v243_v37  ;;  %v244_v42 = vmul.f32 %v451_v38, %v238_v32 }
  0x43   : > { %v224_v43 = vmul.f32 52.0, %v221_v39  ;;  %v222_v44 = vadd.f32 %v219_v40, %v169_v30  ;;  %v220_v45 = vadd.f32 0.5, %v217_v41  ;;  %255 = vst.msk [vmem:[%s152_s18 + $0x8] sm:$0xf0] %vm253_vm3, %v219_v40 }
  0x44   : > { %252 = vst.msk [vmem:[%s152_s18 + $0x10] sm:$0xc] %vm249_vm2, %v244_v42 }
  0x45   : > { %246 = vst.msk [vmem:[%s152_s18] sm:$0x3] %vm245_vm4, %v224_v43  ;;  %v225_v46 = vmul.f32 52.0, %v222_v44  ;;  %v223_v47 = vadd.f32 %v220_v45, %v169_v30 }
  0x46   : > { %256 = vst.msk [vmem:[%s152_s18 + $0x10] sm:$0xf0] %vm253_vm3, %v220_v45 }
  0x47   : > { %247 = vst.msk [vmem:[%s152_s18 + $0x8] sm:$0x3] %vm245_vm4, %v225_v46  ;;  %v226_v48 = vmul.f32 52.0, %v223_v47 }
  0x49   : > { %248 = vst.msk [vmem:[%s152_s18 + $0x10] sm:$0x3] %vm245_vm4, %v226_v48 }
  0x4a   : > { %493 = shalt.err (!%p490_p6)
}
  0x4b   : > { %s494_s4 = scalar_lea.hbm %s693_s9, 384  ;;  %s498_s13 = scalar_lea.hbm %s743_s1, 768 }
  0x4c   : > { %p495_p4 = scmp.ne.s32.totalorder %s693_s9, %s494_s4  ;;  %p499_p13 = scmp.lt.s32.totalorder %s693_s9, %s743_s1 }
  0x4d   : > { %p500_p2 = scmp.lt.s32.totalorder %s498_s13, %s494_s4 }
  0x4e   : > { %p496_p7 = pnand %p495_p4, %p630_p9 }
  0x4f   : > { %p501_p8 = por %p500_p2, %p499_p13 }
  0x50   : > { %p497_p10 = pneg %p496_p7 }
  0x52   : > { %p502_p12 = pnand %p501_p8, %p497_p10 }
  0x54   : > { %505 = shalt.err (!%p502_p12)
}
  0x55   : > { %s567_s22 = smov 128   ;;  %s568_s23 = smov 8  }
  0x56   : > { %375 = dma.vmem_to_hbm [thread:$0]  (%p630_p9), %s687_s24, 384, %s693_s9, %s258_s28, %s567_s22, %s567_s22, %s568_s23  }
  0x57 PF: > { %s288_s18 = sand.u32 1, %s540_s6   ;;  %p749_p0 = scmp.ge.s32.totalorder %s560_s11, 2 }
  0x58   : > { %s289_s25 = scalar_lea.sflag [#allocation4], %s288_s18 }
  0x59   : > { %p382_p1 = pnand %p749_p0, %p637_p11 }
  0x5b   : > { %p383_p3 = pneg %p382_p1 }
  0x5d   : > { %535 = dma.done.wait (%p383_p3), %s289_s25, 384  }
  0x5e   : > { %537 = vsyncadd (%p383_p3), %s289_s25, 4294966912  ;;  %s17_s11 = sadd.s32 1, %s560_s11   ;;  %s750_s6 = smov %s544_s7 }
  0x5f   : > { %p14_p5 = scmp.ge.s32.totalorder %s17_s11, 4   ;;  %s751_s7 = smov %s548_s8 }
  0x60   : > { %s752_s8 = smov %s635_s20  ;;  %s753_s9 = smov %s556_s10 }
  0x61   : > { %s754_s10 = smov %s756_s14  ;;  %16 = sbr.rel (!%p14_p5) target bundleno = 6 (0x6), region = 69 }
  0x66   :  { %294 = vsyncpa [#allocation3], 1 }
  0x67   :  { %296 = vsyncpa [#allocation3 + $0x1], 1 }
  0x68   :  { %297 = vsyncpa [#allocation4], 1 }
  0x69   :  { %299 = vsyncpa [#allocation4 + $0x1], 1 }

</bundles_post_ra>
